<compile_context>
chip_gen: v7x
topology: tpu7x:2x2x1
jax: 0.10.0
libtpu: 0.0.40
codegen_flags: <defaults>
</compile_context>

<pallas_src>
import jax
import jax.numpy as jnp
from jax import lax
from jax.experimental import pallas as pl
from jax.experimental.pallas import tpu as pltpu


def _round_up(x: int, m: int) -> int:
    return ((x + m - 1) // m) * m


def _readout_kernel(ids_row_ref, ids_col_ref, feats_ref, w_ref, b_ref,
                    o_ref, sum_acc, max_acc):
    k = pl.program_id(1)
    nk = pl.num_programs(1)
    tB = sum_acc.shape[0]
    g_off = pl.program_id(0) * tB            # first graph id of this graph block

    @pl.when(k == 0)
    def _init():
        sum_acc[...] = jnp.zeros(sum_acc.shape, sum_acc.dtype)
        max_acc[...] = jnp.full(max_acc.shape, -jnp.inf, max_acc.dtype)

    feats = feats_ref[...]                   # (tN, M)  f32 node features
    ids_row = ids_row_ref[...]               # (1, tN)  int32 node -> graph id
    ids_col = ids_col_ref[...]               # (tN, 1)  same ids, sublane layout

    # Per-node scalar gate: sigmoid(<feats_i, w> + b).  VPU multiply + lane
    # reduction (XLU); exp/reciprocal of the sigmoid go to the EUP.
    logits = jnp.sum(feats * w_ref[...], axis=1, keepdims=True) + b_ref[0]   # (tN, 1)
    gate = jax.nn.sigmoid(logits)                                            # (tN, 1)

    # One-hot membership for this graph block (padding ids == -1 never match),
    # then the weighted sum on the MXU: (tB, tN) @ (tN, M) -> (tB, M).
    g_iota = lax.broadcasted_iota(jnp.int32, (tB, ids_row.shape[1]), 0) + g_off
    seg = (ids_row == g_iota).astype(feats.dtype)                            # (tB, tN)
    sum_acc[...] += jnp.dot(seg, gate * feats,
                            preferred_element_type=jnp.float32)

    # Running per-graph max: one (tN, M) masked reduce per graph in the block
    # (no (B, N, M) blow-up), folded into the (tB, M) running max.
    tile_max_rows = []
    for g in range(tB):                       # tB is small & static (8)
        mask = ids_col == (g + g_off)                                        # (tN, 1)
        tile_max_rows.append(
            jnp.max(jnp.where(mask, feats, -jnp.inf), axis=0, keepdims=True))
    tile_max = jnp.concatenate(tile_max_rows, axis=0)                        # (tB, M)
    max_acc[...] = jnp.maximum(max_acc[...], tile_max)

    @pl.when(k == nk - 1)
    def _store():
        # (tB, 2*M): with M = 64 each row is a full 128-lane vreg and tB = 8
        # rows fill the sublanes -> a single unmasked store.
        o_ref[...] = jnp.concatenate([sum_acc[...], max_acc[...]],
                                     axis=1).astype(o_ref.dtype)


def weighted_sum_and_max(segment_ids, feats, w_gate, b_gate, *, num_graphs,
                         node_tile=512, graph_tile=8):
    """segment_ids: (N,) int node->graph id, feats: (N, M) f32,
    w_gate: (1, M) f32, b_gate: (1,) f32  ->  (num_graphs, 2*M) f32."""
    N, M = feats.shape
    assert segment_ids.shape == (N,)
    assert w_gate.shape == (1, M) and b_gate.shape == (1,)
    B = int(num_graphs)

    # Pad graphs to a multiple of the graph tile (sublane-dense output rows,
    # and a "parallel" axis v7x's two TensorCores can split when B is large).
    tB = graph_tile
    BP = max(tB, _round_up(B, tB))

    # Pad nodes to a multiple of the node tile; padded nodes get id -1.
    tN = min(node_tile, _round_up(N, 8))
    Npad = _round_up(N, tN)

    ids = jnp.full((Npad,), -1, jnp.int32).at[:N].set(segment_ids.astype(jnp.int32))
    ids_row = ids.reshape(1, Npad)            # lane layout (for the one-hot matmul)
    ids_col = ids.reshape(Npad, 1)            # sublane layout (for the max masks)
    feats_p = jnp.zeros((Npad, M), feats.dtype).at[:N, :].set(feats)

    grid = (BP // tB, Npad // tN)

    out = pl.pallas_call(
        _readout_kernel,
        out_shape=jax.ShapeDtypeStruct((BP, 2 * M), jnp.float32),
        grid_spec=pltpu.PrefetchScalarGridSpec(
            num_scalar_prefetch=0,
            grid=grid,
            in_specs=[
                pl.BlockSpec((1, tN), lambda gb, k: (0, k)),     # ids (lane layout)
                pl.BlockSpec((tN, 1), lambda gb, k: (k, 0)),     # ids (sublane layout)
                pl.BlockSpec((tN, M), lambda gb, k: (k, 0)),     # node features
                pl.BlockSpec((1, M), lambda gb, k: (0, 0)),      # gate weight row
                pl.BlockSpec(memory_space=pltpu.MemorySpace.SMEM),  # gate bias scalar
            ],
            out_specs=pl.BlockSpec((tB, 2 * M), lambda gb, k: (gb, 0)),
            scratch_shapes=[
                pltpu.VMEM((tB, M), jnp.float32),   # weighted-sum accumulator
                pltpu.VMEM((tB, M), jnp.float32),   # running-max accumulator
            ],
        ),
        compiler_params=pltpu.CompilerParams(
            dimension_semantics=("parallel", "arbitrary"),
            vmem_limit_bytes=32 * 1024 * 1024,
        ),
    )(ids_row, ids_col, feats_p, w_gate, b_gate)

    return out[:B]


def _readout_ref(segment_ids, feats, w_gate, b_gate, num_graphs):
    """Pure-JAX reference (mirrors the PyTorch/DGL semantics)."""
    gate = jax.nn.sigmoid(jnp.sum(feats * w_gate, axis=1, keepdims=True) + b_gate[0])
    seg = (segment_ids[None, :] == jnp.arange(num_graphs)[:, None]).astype(feats.dtype)
    h_sum = seg @ (gate * feats)
    mask = seg[:, :, None] > 0.0
    h_max = jnp.max(jnp.where(mask, feats[None, :, :], -jnp.inf), axis=1)
    return jnp.concatenate([h_sum, h_max], axis=1)


if __name__ == "__main__":
    key = jax.random.PRNGKey(0)
    k_feat, k_w, k_b = jax.random.split(key, 3)

    # Batch of B = 3 small graphs with [10, 12, 10] nodes -> N = 32 total nodes.
    nodes_per_graph = (10, 12, 10)
    B = len(nodes_per_graph)
    N = sum(nodes_per_graph)
    in_feats = 64   # 2 * 64 = 128-lane output rows (lane-dense stores)

    # Node -> graph id vector (replaces the DGLGraph batch object).
    segment_ids = jnp.concatenate(
        [jnp.full((n,), g, jnp.int32) for g, n in enumerate(nodes_per_graph)])

    feats = jax.random.normal(k_feat, (N, in_feats), jnp.float32)

    # nn.Linear(in_feats, 1) default init: U(-1/sqrt(in_feats), 1/sqrt(in_feats)).
    limit = 1.0 / jnp.sqrt(jnp.float32(in_feats))
    w_gate = jax.random.uniform(k_w, (1, in_feats), jnp.float32, -limit, limit)
    b_gate = jax.random.uniform(k_b, (1,), jnp.float32, -limit, limit)

    out = weighted_sum_and_max(segment_ids, feats, w_gate, b_gate, num_graphs=B)
    out = jax.block_until_ready(out)

    assert out.shape == (B, 2 * in_feats) and out.dtype == jnp.float32
    ref = _readout_ref(segment_ids, feats, w_gate, b_gate, B)
    assert jnp.allclose(out, ref, atol=1e-4, rtol=1e-4), "mismatch vs. JAX reference"

    print("KERNEL_OK")
</pallas_src>

<mosaic_0001>
module attributes {stable_mosaic.version = 11 : i64} {
  func.func @_readout_kernel(%arg0: i32, %arg1: i32, %arg2: memref<1x32xi32, #tpu.memory_space<vmem>>, %arg3: memref<32x1xi32, #tpu.memory_space<vmem>>, %arg4: memref<32x64xf32, #tpu.memory_space<vmem>>, %arg5: memref<1x64xf32, #tpu.memory_space<vmem>>, %arg6: memref<1xf32, #tpu.memory_space<smem>>, %arg7: memref<8x128xf32, #tpu.memory_space<vmem>>, %arg8: memref<8x64xf32, #tpu.memory_space<vmem>>, %arg9: memref<8x64xf32, #tpu.memory_space<vmem>>) attributes {dimension_semantics = [#tpu.dimension_semantics<parallel>, #tpu.dimension_semantics<arbitrary>], iteration_bounds = array<i64: 1, 1>, scalar_prefetch = 0 : i64, scratch_operands = 2 : i64, tpu.core_type = #tpu.core_type<tc>, window_params = [{transform_indices = @transform_0, window_bounds = array<i64: 1, 32>}, {transform_indices = @transform_1, window_bounds = array<i64: 32, 1>}, {transform_indices = @transform_2, window_bounds = array<i64: 32, 64>}, {pipeline_mode = #tpu.pipeline_mode<synchronous>, transform_indices = @transform_3, window_bounds = array<i64: 1, 64>}, {transform_indices = @transform_4, window_bounds = array<i64: 1>}, {transform_indices = @transform_5, window_bounds = array<i64: 8, 128>}]} {
    %c8_i32 = arith.constant 8 : i32
    %0 = arith.muli %arg0, %c8_i32 : i32
    %c0_i32 = arith.constant 0 : i32
    %1 = arith.cmpi eq, %arg1, %c0_i32 : i32
    %2 = arith.extui %1 : i1 to i32
    %c0_i32_0 = arith.constant 0 : i32
    %3 = arith.cmpi ne, %2, %c0_i32_0 : i32
    scf.if %3 {
      %cst_38 = arith.constant 0.000000e+00 : f32
      %112 = vector.broadcast %cst_38 : f32 to vector<8x64xf32>
      %c0_39 = arith.constant 0 : index
      %c0_40 = arith.constant 0 : index
      %113 = vector.load %arg8[%c0_39, %c0_40] : memref<8x64xf32, #tpu.memory_space<vmem>>, vector<8x64xf32>
      tpu.vector_store %arg8[%c0_39, %c0_40], %112 {strides = array<i32>} : memref<8x64xf32, #tpu.memory_space<vmem>>, vector<8x64xf32>,
      %cst_41 = arith.constant 0xFF800000 : f32
      %114 = vector.broadcast %cst_41 : f32 to vector<8x64xf32>
      %c0_42 = arith.constant 0 : index
      %c0_43 = arith.constant 0 : index
      %115 = vector.load %arg9[%c0_42, %c0_43] : memref<8x64xf32, #tpu.memory_space<vmem>>, vector<8x64xf32>
      tpu.vector_store %arg9[%c0_42, %c0_43], %114 {strides = array<i32>} : memref<8x64xf32, #tpu.memory_space<vmem>>, vector<8x64xf32>,
    } else {
    }
    %c0 = arith.constant 0 : index
    %c0_1 = arith.constant 0 : index
    %4 = vector.load %arg4[%c0, %c0_1] : memref<32x64xf32, #tpu.memory_space<vmem>>, vector<32x64xf32>
    %c0_2 = arith.constant 0 : index
    %c0_3 = arith.constant 0 : index
    %5 = vector.load %arg2[%c0_2, %c0_3] : memref<1x32xi32, #tpu.memory_space<vmem>>, vector<1x32xi32>
    %c0_4 = arith.constant 0 : index
    %c0_5 = arith.constant 0 : index
    %6 = vector.load %arg3[%c0_4, %c0_5] : memref<32x1xi32, #tpu.memory_space<vmem>>, vector<32x1xi32>
    %c0_6 = arith.constant 0 : index
    %c0_7 = arith.constant 0 : index
    %7 = vector.load %arg5[%c0_6, %c0_7] : memref<1x64xf32, #tpu.memory_space<vmem>>, vector<1x64xf32>
    %8 = vector.broadcast %7 : vector<1x64xf32> to vector<32x64xf32>
    %9 = arith.mulf %4, %8 : vector<32x64xf32>
    %cst = arith.constant dense<0.000000e+00> : vector<32xf32>
    %10 = vector.multi_reduction <add>, %9, %cst [1] : vector<32x64xf32> to vector<32xf32>
    %11 = vector.shape_cast %10 : vector<32xf32> to vector<32x1xf32>
    %c0_8 = arith.constant 0 : index
    %12 = memref.load %arg6[%c0_8] : memref<1xf32, #tpu.memory_space<smem>>
    %13 = vector.broadcast %12 : f32 to vector<32x1xf32>
    %14 = arith.addf %11, %13 : vector<32x1xf32>
    %15 = arith.negf %14 : vector<32x1xf32>
    %16 = math.exp %15 : vector<32x1xf32>
    %cst_9 = arith.constant 1.000000e+00 : f32
    %17 = vector.broadcast %cst_9 : f32 to vector<32x1xf32>
    %18 = arith.addf %17, %16 : vector<32x1xf32>
    %19 = arith.divf %17, %18 : vector<32x1xf32>
    %20 = tpu.iota {dimensions = array<i32: 0>} : vector<8x32xi32>
    %21 = vector.broadcast %0 : i32 to vector<8x32xi32>
    %22 = arith.addi %20, %21 : vector<8x32xi32>
    %23 = vector.broadcast %5 : vector<1x32xi32> to vector<8x32xi32>
    %24 = arith.cmpi eq, %23, %22 : vector<8x32xi32>
    %25 = arith.extui %24 : vector<8x32xi1> to vector<8x32xi32>
    %26 = arith.sitofp %25 : vector<8x32xi32> to vector<8x32xf32>
    %c0_10 = arith.constant 0 : index
    %c0_11 = arith.constant 0 : index
    %27 = vector.load %arg8[%c0_10, %c0_11] : memref<8x64xf32, #tpu.memory_space<vmem>>, vector<8x64xf32>
    %28 = vector.broadcast %19 : vector<32x1xf32> to vector<32x64xf32>
    %29 = arith.mulf %28, %4 : vector<32x64xf32>
    %cst_12 = arith.constant dense<0.000000e+00> : vector<8x64xf32>
    %30 = tpu.matmul %26, %29, %cst_12 {dimension_numbers = #tpu.dot_dimension_numbers<[1], [0], [0], [1], [0, 0, 1, 1], [], []>} : vector<8x32xf32>, vector<32x64xf32>, vector<8x64xf32> -> vector<8x64xf32>
    %31 = arith.addf %27, %30 : vector<8x64xf32>
    %c0_13 = arith.constant 0 : index
    %c0_14 = arith.constant 0 : index
    %32 = vector.load %arg8[%c0_13, %c0_14] : memref<8x64xf32, #tpu.memory_space<vmem>>, vector<8x64xf32>
    tpu.vector_store %arg8[%c0_13, %c0_14], %31 {strides = array<i32>} : memref<8x64xf32, #tpu.memory_space<vmem>>, vector<8x64xf32>,
    %c0_i32_15 = arith.constant 0 : i32
    %33 = arith.addi %c0_i32_15, %0 : i32
    %34 = vector.broadcast %33 : i32 to vector<32x1xi32>
    %35 = arith.cmpi eq, %6, %34 : vector<32x1xi32>
    %cst_16 = arith.constant 0xFF800000 : f32
    %36 = vector.shape_cast %35 : vector<32x1xi1> to vector<32x1xi1>
    %37 = vector.broadcast %36 : vector<32x1xi1> to vector<32x64xi1>
    %38 = vector.broadcast %cst_16 : f32 to vector<32x64xf32>
    %39 = arith.select %37, %4, %38 : vector<32x64xi1>, vector<32x64xf32>
    %cst_17 = arith.constant dense<0xFF800000> : vector<64xf32>
    %40 = vector.multi_reduction <maximumf>, %39, %cst_17 [0] : vector<32x64xf32> to vector<64xf32>
    %41 = vector.shape_cast %40 : vector<64xf32> to vector<1x64xf32>
    %c1_i32 = arith.constant 1 : i32
    %42 = arith.addi %c1_i32, %0 : i32
    %43 = vector.broadcast %42 : i32 to vector<32x1xi32>
    %44 = arith.cmpi eq, %6, %43 : vector<32x1xi32>
    %cst_18 = arith.constant 0xFF800000 : f32
    %45 = vector.shape_cast %44 : vector<32x1xi1> to vector<32x1xi1>
    %46 = vector.broadcast %45 : vector<32x1xi1> to vector<32x64xi1>
    %47 = vector.broadcast %cst_18 : f32 to vector<32x64xf32>
    %48 = arith.select %46, %4, %47 : vector<32x64xi1>, vector<32x64xf32>
    %cst_19 = arith.constant dense<0xFF800000> : vector<64xf32>
    %49 = vector.multi_reduction <maximumf>, %48, %cst_19 [0] : vector<32x64xf32> to vector<64xf32>
    %50 = vector.shape_cast %49 : vector<64xf32> to vector<1x64xf32>
    %c2_i32 = arith.constant 2 : i32
    %51 = arith.addi %c2_i32, %0 : i32
    %52 = vector.broadcast %51 : i32 to vector<32x1xi32>
    %53 = arith.cmpi eq, %6, %52 : vector<32x1xi32>
    %cst_20 = arith.constant 0xFF800000 : f32
    %54 = vector.shape_cast %53 : vector<32x1xi1> to vector<32x1xi1>
    %55 = vector.broadcast %54 : vector<32x1xi1> to vector<32x64xi1>
    %56 = vector.broadcast %cst_20 : f32 to vector<32x64xf32>
    %57 = arith.select %55, %4, %56 : vector<32x64xi1>, vector<32x64xf32>
    %cst_21 = arith.constant dense<0xFF800000> : vector<64xf32>
    %58 = vector.multi_reduction <maximumf>, %57, %cst_21 [0] : vector<32x64xf32> to vector<64xf32>
    %59 = vector.shape_cast %58 : vector<64xf32> to vector<1x64xf32>
    %c3_i32 = arith.constant 3 : i32
    %60 = arith.addi %c3_i32, %0 : i32
    %61 = vector.broadcast %60 : i32 to vector<32x1xi32>
    %62 = arith.cmpi eq, %6, %61 : vector<32x1xi32>
    %cst_22 = arith.constant 0xFF800000 : f32
    %63 = vector.shape_cast %62 : vector<32x1xi1> to vector<32x1xi1>
    %64 = vector.broadcast %63 : vector<32x1xi1> to vector<32x64xi1>
    %65 = vector.broadcast %cst_22 : f32 to vector<32x64xf32>
    %66 = arith.select %64, %4, %65 : vector<32x64xi1>, vector<32x64xf32>
    %cst_23 = arith.constant dense<0xFF800000> : vector<64xf32>
    %67 = vector.multi_reduction <maximumf>, %66, %cst_23 [0] : vector<32x64xf32> to vector<64xf32>
    %68 = vector.shape_cast %67 : vector<64xf32> to vector<1x64xf32>
    %c4_i32 = arith.constant 4 : i32
    %69 = arith.addi %c4_i32, %0 : i32
    %70 = vector.broadcast %69 : i32 to vector<32x1xi32>
    %71 = arith.cmpi eq, %6, %70 : vector<32x1xi32>
    %cst_24 = arith.constant 0xFF800000 : f32
    %72 = vector.shape_cast %71 : vector<32x1xi1> to vector<32x1xi1>
    %73 = vector.broadcast %72 : vector<32x1xi1> to vector<32x64xi1>
    %74 = vector.broadcast %cst_24 : f32 to vector<32x64xf32>
    %75 = arith.select %73, %4, %74 : vector<32x64xi1>, vector<32x64xf32>
    %cst_25 = arith.constant dense<0xFF800000> : vector<64xf32>
    %76 = vector.multi_reduction <maximumf>, %75, %cst_25 [0] : vector<32x64xf32> to vector<64xf32>
    %77 = vector.shape_cast %76 : vector<64xf32> to vector<1x64xf32>
    %c5_i32 = arith.constant 5 : i32
    %78 = arith.addi %c5_i32, %0 : i32
    %79 = vector.broadcast %78 : i32 to vector<32x1xi32>
    %80 = arith.cmpi eq, %6, %79 : vector<32x1xi32>
    %cst_26 = arith.constant 0xFF800000 : f32
    %81 = vector.shape_cast %80 : vector<32x1xi1> to vector<32x1xi1>
    %82 = vector.broadcast %81 : vector<32x1xi1> to vector<32x64xi1>
    %83 = vector.broadcast %cst_26 : f32 to vector<32x64xf32>
    %84 = arith.select %82, %4, %83 : vector<32x64xi1>, vector<32x64xf32>
    %cst_27 = arith.constant dense<0xFF800000> : vector<64xf32>
    %85 = vector.multi_reduction <maximumf>, %84, %cst_27 [0] : vector<32x64xf32> to vector<64xf32>
    %86 = vector.shape_cast %85 : vector<64xf32> to vector<1x64xf32>
    %c6_i32 = arith.constant 6 : i32
    %87 = arith.addi %c6_i32, %0 : i32
    %88 = vector.broadcast %87 : i32 to vector<32x1xi32>
    %89 = arith.cmpi eq, %6, %88 : vector<32x1xi32>
    %cst_28 = arith.constant 0xFF800000 : f32
    %90 = vector.shape_cast %89 : vector<32x1xi1> to vector<32x1xi1>
    %91 = vector.broadcast %90 : vector<32x1xi1> to vector<32x64xi1>
    %92 = vector.broadcast %cst_28 : f32 to vector<32x64xf32>
    %93 = arith.select %91, %4, %92 : vector<32x64xi1>, vector<32x64xf32>
    %cst_29 = arith.constant dense<0xFF800000> : vector<64xf32>
    %94 = vector.multi_reduction <maximumf>, %93, %cst_29 [0] : vector<32x64xf32> to vector<64xf32>
    %95 = vector.shape_cast %94 : vector<64xf32> to vector<1x64xf32>
    %c7_i32 = arith.constant 7 : i32
    %96 = arith.addi %c7_i32, %0 : i32
    %97 = vector.broadcast %96 : i32 to vector<32x1xi32>
    %98 = arith.cmpi eq, %6, %97 : vector<32x1xi32>
    %cst_30 = arith.constant 0xFF800000 : f32
    %99 = vector.shape_cast %98 : vector<32x1xi1> to vector<32x1xi1>
    %100 = vector.broadcast %99 : vector<32x1xi1> to vector<32x64xi1>
    %101 = vector.broadcast %cst_30 : f32 to vector<32x64xf32>
    %102 = arith.select %100, %4, %101 : vector<32x64xi1>, vector<32x64xf32>
    %cst_31 = arith.constant dense<0xFF800000> : vector<64xf32>
    %103 = vector.multi_reduction <maximumf>, %102, %cst_31 [0] : vector<32x64xf32> to vector<64xf32>
    %104 = vector.shape_cast %103 : vector<64xf32> to vector<1x64xf32>
    %105 = tpu.concatenate %41, %50, %59, %68, %77, %86, %95, %104 in 0 : vector<1x64xf32>, vector<1x64xf32>, vector<1x64xf32>, vector<1x64xf32>, vector<1x64xf32>, vector<1x64xf32>, vector<1x64xf32>, vector<1x64xf32> -> vector<8x64xf32>
    %c0_32 = arith.constant 0 : index
    %c0_33 = arith.constant 0 : index
    %106 = vector.load %arg9[%c0_32, %c0_33] : memref<8x64xf32, #tpu.memory_space<vmem>>, vector<8x64xf32>
    %107 = arith.maximumf %106, %105 : vector<8x64xf32>
    %c0_34 = arith.constant 0 : index
    %c0_35 = arith.constant 0 : index
    %108 = vector.load %arg9[%c0_34, %c0_35] : memref<8x64xf32, #tpu.memory_space<vmem>>, vector<8x64xf32>
    tpu.vector_store %arg9[%c0_34, %c0_35], %107 {strides = array<i32>} : memref<8x64xf32, #tpu.memory_space<vmem>>, vector<8x64xf32>,
    %c0_i32_36 = arith.constant 0 : i32
    %109 = arith.cmpi eq, %arg1, %c0_i32_36 : i32
    %110 = arith.extui %109 : i1 to i32
    %c0_i32_37 = arith.constant 0 : i32
    %111 = arith.cmpi ne, %110, %c0_i32_37 : i32
    scf.if %111 {
      %c0_38 = arith.constant 0 : index
      %c0_39 = arith.constant 0 : index
      %112 = vector.load %arg8[%c0_38, %c0_39] : memref<8x64xf32, #tpu.memory_space<vmem>>, vector<8x64xf32>
      %c0_40 = arith.constant 0 : index
      %c0_41 = arith.constant 0 : index
      %113 = vector.load %arg9[%c0_40, %c0_41] : memref<8x64xf32, #tpu.memory_space<vmem>>, vector<8x64xf32>
      %114 = tpu.concatenate %112, %113 in 1 : vector<8x64xf32>, vector<8x64xf32> -> vector<8x128xf32>
      %c0_42 = arith.constant 0 : index
      %c0_43 = arith.constant 0 : index
      %115 = vector.load %arg7[%c0_42, %c0_43] : memref<8x128xf32, #tpu.memory_space<vmem>>, vector<8x128xf32>
      tpu.vector_store %arg7[%c0_42, %c0_43], %114 {strides = array<i32>} : memref<8x128xf32, #tpu.memory_space<vmem>>, vector<8x128xf32>,
    } else {
    }
    return
  }
  func.func @transform_0(%arg0: i32, %arg1: i32) -> (i32, i32) {
    %c0_i32 = arith.constant 0 : i32
    %c0_i32_0 = arith.constant 0 : i32
    return %c0_i32, %arg1 : i32, i32
  }
  func.func @transform_1(%arg0: i32, %arg1: i32) -> (i32, i32) {
    %c0_i32 = arith.constant 0 : i32
    %c0_i32_0 = arith.constant 0 : i32
    return %arg1, %c0_i32 : i32, i32
  }
  func.func @transform_2(%arg0: i32, %arg1: i32) -> (i32, i32) {
    %c0_i32 = arith.constant 0 : i32
    %c0_i32_0 = arith.constant 0 : i32
    return %arg1, %c0_i32 : i32, i32
  }
  func.func @transform_3(%arg0: i32, %arg1: i32) -> (i32, i32) {
    %c0_i32 = arith.constant 0 : i32
    %c0_i32_0 = arith.constant 0 : i32
    %c0_i32_1 = arith.constant 0 : i32
    return %c0_i32, %c0_i32_0 : i32, i32
  }
  func.func @transform_4(%arg0: i32, %arg1: i32) -> i32 {
    %c0_i32 = arith.constant 0 : i32
    %c0_i32_0 = arith.constant 0 : i32
    return %c0_i32 : i32
  }
  func.func @transform_5(%arg0: i32, %arg1: i32) -> (i32, i32) {
    %c0_i32 = arith.constant 0 : i32
    %c0_i32_0 = arith.constant 0 : i32
    return %arg0, %c0_i32 : i32, i32
  }
}

</mosaic_0001>

<bundles_post_ra>
// kernel: tpu_custom_call.1
= control target key start
LH: loop header
LB: loop body
LE: loop exit
PB: predicated region body
PF: predicated region fallthrough
CT: control target
= control target key end

     0   :  { %vm27_vm0 = vcmask 523264   ;;  %v648_v7 = vmov 0   ;;  %s922_s0 = inlined_call_operand.vmem [shape: s32[1,32], index: 0, kind: input, shape index: {}]   ;;  %s923_s1 = inlined_call_operand.vmem [shape: s32[32,1], index: 1, kind: input, shape index: {}]   ;;  %s924_s2 = inlined_call_operand.vmem [shape: f32[32,64], index: 2, kind: input, shape index: {}]   ;;  %s925_s3 = inlined_call_operand.vmem [shape: f32[1,64], index: 3, kind: input, shape index: {}]   ;;  %s926_s4 = inlined_call_operand.<no memory space> [shape: f32[1], index: 4, kind: input, shape index: {}]   ;;  %s927_s5 = inlined_call_operand.hbm [shape: f32[8,128], index: 5, kind: output, shape index: {}]  }
   0x1   :  { %v688_v0 = vld [vmem:[%s924_s2 + $0x10] sm:$0xff]  ;;  %v569_v1 = vld [vmem:[%s925_s3] ss:$0 sm:$0xff]  ;;  %v703_v5 = vld [vmem:[%s924_s2 + $0x18] sm:$0xff]  ;;  %607 = vset.pattern.permute.xlu1 %v648_v7  ;;  %606 = vset.pattern.permute.xlu0 %v648_v7 }
   0x2   :  { %v696_v2 = vld [vmem:[%s924_s2] sm:$0xff]  ;;  %v48_v3 = vmul.f32 %v569_v1, %v688_v0  ;;  %v708_v6 = vld [vmem:[%s924_s2 + $0x8] sm:$0xff]  ;;  %v49_v8 = vmul.f32 %v569_v1, %v703_v5 }
   0x3   :  { %v46_v4 = vmul.f32 %v569_v1, %v696_v2  ;;  %v47_v9 = vmul.f32 %v569_v1, %v708_v6 }
   0x4   :  { %v57_v10 = vsel %vm27_vm0, %v48_v3, 0.0 }
   0x5   :  { %v51_v11 = vsel %vm27_vm0, %v46_v4, 0.0 }
   0x6   :  { %11 = vsyncpa [#allocation6], 0  ;;  %58 = vadd.xlane.f32.xlu1 %v57_v10  ;;  %52 = vadd.xlane.f32.xlu0 %v51_v11  ;;  %v60_v12 = vsel %vm27_vm0, %v49_v8, 0.0  ;;  %v54_v13 = vsel %vm27_vm0, %v47_v9, 0.0  ;;  %v721_v14 = vld [vmem:[%s923_s1 + $0x8] sm:$0xff]  ;;  %v726_v15 = vld [vmem:[%s923_s1 + $0x10] sm:$0xff]  ;;  %v64_v53 = vstv %s926_s4 }
   0x7   :  { %vm488_vm1 = vcmp.eq.s32.totalorder %v726_v15, 7  ;;  %vm186_vm2 = vcmp.eq.s32.totalorder %v721_v14, 0  ;;  %vm187_vm3 = vcmp.eq.s32.totalorder %v726_v15, 0  ;;  %v738_v18 = vld [vmem:[%s923_s1] sm:$0xff]  ;;  %v743_v19 = vld [vmem:[%s923_s1 + $0x18] sm:$0xff]  ;;  %vm272_vm6 = vcmp.eq.s32.totalorder %v721_v14, 2 }
   0x8   :  { %v731_v16 = vsel %vm488_vm1, 1, %v648_v7  ;;  %v190_v17 = vsel %vm186_vm2, 1, %v648_v7  ;;  %vm185_vm4 = vcmp.eq.s32.totalorder %v738_v18, 0  ;;  %v191_v20 = vsel %vm187_vm3, 1, %v648_v7  ;;  %s654_s11 = smov [#allocation5]  }
   0x9   :  { %vm188_vm5 = vcmp.eq.s32.totalorder %v743_v19, 0  ;;  %v189_v21 = vsel %vm185_vm4, 1, %v648_v7  ;;  %vm228_vm7 = vcmp.eq.s32.totalorder %v738_v18, 1  ;;  %v276_v23 = vsel %vm272_vm6, 1, %v648_v7  ;;  %s561_s12 = sshll.u32 %s654_s11, 4  ;;  %s562_s12 = int_to_ptr.vmem [resolvable:$true] %s561_s12 }
   0xa   :  { %61 = vadd.xlane.f32.xlu1 %v60_v12  ;;  %55 = vadd.xlane.f32.xlu0 %v54_v13  ;;  %v192_v22 = vsel %vm188_vm5, 1, %v648_v7  ;;  %vm274_vm8 = vcmp.eq.s32.totalorder %v743_v19, 2  ;;  %v232_v24 = vsel %vm228_vm7, 1, %v648_v7  ;;  %vm229_vm9 = vcmp.eq.s32.totalorder %v721_v14, 1  ;;  %s624_s13 = scalar_lea.vmem %s562_s12, 128  ;;  %p629_p1 = scmp.lt.s32.totalorder %s562_s12, %s562_s12 }
   0xb   :  { %v278_v25 = vsel %vm274_vm8, 1, %v648_v7  ;;  %vm315_vm10 = vcmp.eq.s32.totalorder %v721_v14, 3  ;;  %v233_v26 = vsel %vm229_vm9, 1, %v648_v7  ;;  %vm230_vm11 = vcmp.eq.s32.totalorder %v726_v15, 1  ;;  %p625_p0 = scmp.ne.s32.totalorder %s562_s12, %s624_s13  ;;  %p630_p2 = scmp.lt.s32.totalorder %s624_s13, %s624_s13 }
   0xc   :  { %v319_v27 = vsel %vm315_vm10, 1, %v648_v7  ;;  %vm317_vm12 = vcmp.eq.s32.totalorder %v743_v19, 3  ;;  %v234_v28 = vsel %vm230_vm11, 1, %v648_v7  ;;  %vm231_vm13 = vcmp.eq.s32.totalorder %v743_v19, 1 }
   0xd   :  { %v321_v29 = vsel %vm317_vm12, 1, %v648_v7  ;;  %vm358_vm14 = vcmp.eq.s32.totalorder %v721_v14, 4  ;;  %v235_v30 = vsel %vm231_vm13, 1, %v648_v7  ;;  %vm271_vm15 = vcmp.eq.s32.totalorder %v738_v18, 2  ;;  %p631_p3 = por %p630_p2, %p629_p1 }
   0xe   :  { %v362_v31 = vsel %vm358_vm14, 1, %v648_v7  ;;  %vm360_vm1 = vcmp.eq.s32.totalorder %v743_v19, 4  ;;  %v275_v32 = vsel %vm271_vm15, 1, %v648_v7  ;;  %vm273_vm2 = vcmp.eq.s32.totalorder %v726_v15, 2 }
   0xf   :  { %v364_v33 = vsel %vm360_vm1, 1, %v648_v7  ;;  %vm401_vm3 = vcmp.eq.s32.totalorder %v721_v14, 5  ;;  %v277_v34 = vsel %vm273_vm2, 1, %v648_v7  ;;  %v649_v35 = vmov 0.0|0.0   ;;  %p632_p4 = pnand %p631_p3, %p625_p0 }
  0x10   :  { %593 = vmatprep.subr.bf16.mxu0 %v649_v35  ;;  %vm314_vm4 = vcmp.eq.s32.totalorder %v738_v18, 3  ;;  %v405_v36 = vsel %vm401_vm3, 1, %v648_v7  ;;  %vm403_vm5 = vcmp.eq.s32.totalorder %v743_v19, 5  ;;  %vm316_vm6 = vcmp.eq.s32.totalorder %v726_v15, 3 }
  0x11   :  { %v318_v37 = vsel %vm314_vm4, 1, %v648_v7  ;;  %v407_v38 = vsel %vm403_vm5, 1, %v648_v7  ;;  %vm444_vm7 = vcmp.eq.s32.totalorder %v721_v14, 6  ;;  %v650_v39 = vmov 0.0  }
  0x12   :  { %28 = vst.msk [vmem:[#allocation2] sm:$0xff] %vm27_vm0, %v650_v39  ;;  %vm651_vm8 = vmmov 0   ;;  %v320_v40 = vsel %vm316_vm6, 1, %v648_v7  ;;  %vm357_vm9 = vcmp.eq.s32.totalorder %v738_v18, 4  ;;  %v448_v41 = vsel %vm444_vm7, 1, %v648_v7 }
  0x13   :  { %590 = vmatprep.mubr.msk.f32.mxu0 %vm651_vm8, %v650_v39  ;;  %vm446_vm10 = vcmp.eq.s32.totalorder %v743_v19, 6  ;;  %v361_v42 = vsel %vm357_vm9, 1, %v648_v7  ;;  %vm359_vm11 = vcmp.eq.s32.totalorder %v726_v15, 4  ;;  %vm487_vm12 = vcmp.eq.s32.totalorder %v721_v14, 7 }
  0x14   :  { %v450_v43 = vsel %vm446_vm10, 1, %v648_v7  ;;  %v363_v44 = vsel %vm359_vm11, 1, %v648_v7  ;;  %vm400_vm13 = vcmp.eq.s32.totalorder %v738_v18, 5  ;;  %v491_v45 = vsel %vm487_vm12, 1, %v648_v7 }
  0x15   :  { %vm489_vm14 = vcmp.eq.s32.totalorder %v743_v19, 7  ;;  %v404_v46 = vsel %vm400_vm13, 1, %v648_v7  ;;  %vm402_vm15 = vcmp.eq.s32.totalorder %v726_v15, 5  ;;  %vm443_vm1 = vcmp.eq.s32.totalorder %v738_v18, 6 }
  0x16   :  { %v493_v47 = vsel %vm489_vm14, 1, %v648_v7  ;;  %v406_v48 = vsel %vm402_vm15, 1, %v648_v7  ;;  %v447_v49 = vsel %vm443_vm1, 1, %v648_v7  ;;  %vm445_vm2 = vcmp.eq.s32.totalorder %v726_v15, 6 }
  0x17   :  { %v449_v50 = vsel %vm445_vm2, 1, %v648_v7  ;;  %vm486_vm3 = vcmp.eq.s32.totalorder %v738_v18, 7  ;;  %v652_v52 = vmov -inf   ;;  %vm109_vm9 = vcmask 261120  }
  0x18   :  { %v490_v51 = vsel %vm486_vm3, 1, %v648_v7  ;;  %29 = vst.msk [vmem:[#allocation3] sm:$0xff] %vm27_vm0, %v652_v52 }
  0x1b   :  { %197 = vperm.xlu1 %607, %v190_v17  }
  0x1f   :  { %200 = vperm.xlu1 %607, %v191_v20  }
  0x20   :  { %194 = vperm.xlu0 %606, %v189_v21  }
  0x23   :  { %203 = vperm.xlu1 %607, %v192_v22  }
  0x24   :  { %283 = vperm.xlu0 %606, %v276_v23  }
  0x27   :  { %237 = vperm.xlu1 %607, %v232_v24  }
  0x28   :  { %289 = vperm.xlu0 %606, %v278_v25  }
  0x2b   :  { %240 = vperm.xlu1 %607, %v233_v26  }
  0x2c   :  { %326 = vperm.xlu0 %606, %v319_v27   ;;  %v93_v27 = vlaneseq }
  0x2f   :  { %243 = vperm.xlu1 %607, %v234_v28  }
  0x30   :  { %332 = vperm.xlu0 %606, %v321_v29  }
  0x33   :  { %246 = vperm.xlu1 %607, %v235_v30  }
  0x34   :  { %369 = vperm.xlu0 %606, %v362_v31  }
  0x37   :  { %280 = vperm.xlu1 %607, %v275_v32  }
  0x38   :  { %375 = vperm.xlu0 %606, %v364_v33  }
  0x3b   :  { %286 = vperm.xlu1 %607, %v277_v34   ;;  %v94_v34 = vshrl.u32 %v93_v27, 7 }
  0x3c   :  { %412 = vperm.xlu0 %606, %v405_v36  }
  0x3f   :  { %323 = vperm.xlu1 %607, %v318_v37  }
  0x40   :  { %418 = vperm.xlu0 %606, %v407_v38  }
  0x43   :  { %329 = vperm.xlu1 %607, %v320_v40  }
  0x44   :  { %455 = vperm.xlu0 %606, %v448_v41   ;;  %v574_v41 = vld [vmem:[%s922_s0] ss:$0 sm:$0xff]  ;;  %s653_s0 = smov 64  }
  0x45   :  { %vm101_vm5 = vcmp.eq.s32.totalorder %v574_v41, %v94_v34 }
  0x47   :  { %366 = vperm.xlu1 %607, %v361_v42  }
  0x48   :  { %461 = vperm.xlu0 %606, %v450_v43  }
  0x4b   :  { %372 = vperm.xlu1 %607, %v363_v44  }
  0x4c   :  { %498 = vperm.xlu0 %606, %v491_v45  }
  0x4f   :  { %409 = vperm.xlu1 %607, %v404_v46   ;;  %v575_v46 = vsel %vm101_vm5, 1.0, %v650_v39 }
  0x50   :  { %504 = vperm.xlu0 %606, %v493_v47  }
  0x53   :  { %415 = vperm.xlu1 %607, %v406_v48  }
  0x57   :  { %452 = vperm.xlu1 %607, %v447_v49  }
  0x5b   :  { %458 = vperm.xlu1 %607, %v449_v50  }
  0x5f   :  { %495 = vperm.xlu1 %607, %v490_v51  }
  0x63   :  { %501 = vperm.xlu1 %607, %v731_v16  }
  0x93   :  { %v59_v54 = vpop.xlane.xlu1 %58  ;;  %v53_v55 = vpop.xlane.xlu0 %52 }
  0x94   :  { %v67_v56 = vadd.f32 %v64_v53, %v59_v54  ;;  %v65_v57 = vadd.f32 %v64_v53, %v53_v55 }
  0x96   :  { %v572_v58 = vmul.f32 -1.442695, %v67_v56  ;;  %v570_v59 = vmul.f32 -1.442695, %v65_v57 }
  0x97   :  { %v62_v60 = vpop.xlane.xlu1 %61  ;;  %v56_v61 = vpop.xlane.xlu0 %55 }
  0x98   :  { %608 = vpow2.f32 %v572_v58  ;;  %v68_v62 = vadd.f32 %v64_v53, %v62_v60  ;;  %v66_v63 = vadd.f32 %v64_v53, %v56_v61 }
  0x99   :  { %610 = vpow2.f32 %v570_v59 }
  0x9a   :  { %v573_v1 = vmul.f32 -1.442695, %v68_v62  ;;  %v571_v3 = vmul.f32 -1.442695, %v66_v63 }
  0x9b   :  { %v198_v4 = vpop.permute.xlu1 %197 }
  0x9c   :  { %612 = vpow2.f32 %v573_v1  ;;  %vm206_vm4 = vcmp.eq.s32.totalorder %v198_v4, 1 }
  0x9d   :  { %614 = vpow2.f32 %v571_v3  ;;  %v210_v45 = vsel %vm206_vm4, %v708_v6, -inf }
  0x9e   :  { %v214_v51 = vsel %vm27_vm0, %v210_v45, -inf }
  0x9f   :  { %v201_v7 = vpop.permute.xlu1 %200  ;;  %v195_v8 = vpop.permute.xlu0 %194 }
  0xa0   :  { %vm207_vm6 = vcmp.eq.s32.totalorder %v201_v7, 1  ;;  %vm205_vm8 = vcmp.eq.s32.totalorder %v195_v8, 1 }
  0xa1   :  { %v211_v47 = vsel %vm207_vm6, %v688_v0, -inf  ;;  %v209_v49 = vsel %vm205_vm8, %v696_v2, -inf }
  0xa2   :  { %v609_v9 = vpop.eup %608  ;;  %v215_v52 = vsel %vm27_vm0, %v211_v47, -inf  ;;  %v213_v54 = vsel %vm27_vm0, %v209_v49, -inf }
  0xa3   :  { %v611_v10 = vpop.eup %610  ;;  %v83_v11 = vadd.f32 1.0, %v609_v9  ;;  %v204_v12 = vpop.permute.xlu1 %203  ;;  %v217_v56 = vmax.f32 %v213_v54, %v214_v51 }
  0xa4   :  { %v813_v13 = vpop.permute.xlu0 %283  ;;  %v81_v14 = vadd.f32 1.0, %v611_v10  ;;  %vm208_vm7 = vcmp.eq.s32.totalorder %v204_v12, 1 }
  0xa5   :  { %616 = vrcp.f32 %v83_v11  ;;  %v212_v48 = vsel %vm208_vm7, %v703_v5, -inf  ;;  %vm292_vm10 = vcmp.eq.s32.totalorder %v813_v13, 1 }
  0xa6   :  { %v613_v15 = vpop.eup %612  ;;  %618 = vrcp.f32 %v81_v14  ;;  %v216_v53 = vsel %vm27_vm0, %v212_v48, -inf  ;;  %v296_v57 = vsel %vm292_vm10, %v708_v6, -inf }
  0xa7   :  { %v615_v16 = vpop.eup %614  ;;  %v84_v17 = vadd.f32 1.0, %v613_v15  ;;  %v238_v18 = vpop.permute.xlu1 %237  ;;  %v218_v55 = vmax.f32 %v215_v52, %v216_v53  ;;  %v851_v1 = vsel %vm27_vm0, %v296_v57, -inf }
  0xa8   :  { %v815_v19 = vpop.permute.xlu0 %289  ;;  %v82_v20 = vadd.f32 1.0, %v615_v16  ;;  %vm248_vm11 = vcmp.eq.s32.totalorder %v238_v18, 1 }
  0xa9   :  { %620 = vrcp.f32 %v84_v17  ;;  %vm294_vm15 = vcmp.eq.s32.totalorder %v815_v19, 1  ;;  %v252_v58 = vsel %vm248_vm11, %v696_v2, -inf  ;;  %v219_v11 = vmax.f32 %v217_v56, %v218_v55 }
  0xaa   :  { %622 = vrcp.f32 %v82_v20  ;;  %v298_v63 = vsel %vm294_vm15, %v703_v5, -inf  ;;  %v256_v7 = vsel %vm27_vm0, %v252_v58, -inf }
  0xab   :  { %v241_v21 = vpop.permute.xlu1 %240  ;;  %v302_v12 = vsel %vm27_vm0, %v298_v63, -inf }
  0xac   :  { %v327_v22 = vpop.permute.xlu0 %326  ;;  %vm249_vm12 = vcmp.eq.s32.totalorder %v241_v21, 1 }
  0xad   :  { %vm335_vm1 = vcmp.eq.s32.totalorder %v327_v22, 1  ;;  %v253_v59 = vsel %vm249_vm12, %v708_v6, -inf }
  0xae   :  { %v339_v3 = vsel %vm335_vm1, %v708_v6, -inf  ;;  %v257_v8 = vsel %vm27_vm0, %v253_v59, -inf }
  0xaf   :  { %v244_v23 = vpop.permute.xlu1 %243  ;;  %v617_v25 = vpop.eup %616  ;;  %v343_v13 = vsel %vm27_vm0, %v339_v3, -inf  ;;  %v260_v15 = vmax.f32 %v256_v7, %v257_v8 }
  0xb0   :  { %v817_v24 = vpop.permute.xlu0 %332  ;;  %v619_v26 = vpop.eup %618  ;;  %v107_v38 = vmul.f32 %v617_v25, %v688_v0  ;;  %vm250_vm13 = vcmp.eq.s32.totalorder %v244_v23, 1 }
  0xb1   :  { %v105_v32 = vmul.f32 %v619_v26, %v696_v2  ;;  %v254_v60 = vsel %vm250_vm13, %v688_v0, -inf  ;;  %vm337_vm2 = vcmp.eq.s32.totalorder %v817_v24, 1 }
  0xb2   :  { %v258_v9 = vsel %vm27_vm0, %v254_v60, -inf  ;;  %v341_v14 = vsel %vm337_vm2, %v703_v5, -inf }
  0xb3   :  { %v621_v28 = vpop.eup %620  ;;  %v247_v29 = vpop.permute.xlu1 %246  ;;  %v345_v21 = vsel %vm27_vm0, %v341_v14, -inf }
  0xb4   :  { %v819_v30 = vpop.permute.xlu0 %369  ;;  %v623_v31 = vpop.eup %622  ;;  %v108_v40 = vmul.f32 %v621_v28, %v703_v5  ;;  %vm251_vm14 = vcmp.eq.s32.totalorder %v247_v29, 1 }
  0xb5   :  { %v106_v33 = vmul.f32 %v623_v31, %v708_v6  ;;  %v255_v61 = vsel %vm251_vm14, %v703_v5, -inf  ;;  %vm378_vm7 = vcmp.eq.s32.totalorder %v819_v30, 1 }
  0xb6   :  { %v597_v44 = vpack.c.bf16 %v108_v40, %v107_v38  ;;  %v259_v10 = vsel %vm27_vm0, %v255_v61, -inf  ;;  %v382_v24 = vsel %vm378_vm7, %v708_v6, -inf }
  0xb7   :  { %v823_v36 = vpop.permute.xlu1 %280  ;;  %v594_v37 = vpack.c.bf16 %v106_v33, %v105_v32  ;;  %v261_v16 = vmax.f32 %v258_v9, %v259_v10  ;;  %v386_v45 = vsel %vm27_vm0, %v382_v24, -inf }
  0xb8   :  { %v830_v42 = vpop.permute.xlu0 %375  ;;  %vm291_vm3 = vcmp.eq.s32.totalorder %v823_v36, 1 }
  0xb9   :  { %595 = vmatpush3.bf16.msra.mxu0 %v594_v37  ;;  %vm380_vm8 = vcmp.eq.s32.totalorder %v830_v42, 1  ;;  %v295_v19 = vsel %vm291_vm3, %v696_v2, -inf  ;;  %v262_v27 = vmax.f32 %v260_v15, %v261_v16  ;;  %v220_v42 = vrot.slane %v219_v11, 4 }
  0xba   :  { %596 = vmatprep.subr.bf16.mxu0 %v649_v35  ;;  %v384_v25 = vsel %vm380_vm8, %v703_v5, -inf  ;;  %v299_v28 = vsel %vm27_vm0, %v295_v19, -inf  ;;  %vm527_vm8 = vcmask 1040384  }
  0xbb   :  { %v287_v43 = vpop.permute.xlu1 %286  ;;  %v388_v36 = vsel %vm27_vm0, %v384_v25, -inf  ;;  %v263_v53 = vrot.slane %v262_v27, 4  ;;  %v221_v57 = vmax.f32 %v219_v11, %v220_v42 }
  0xbc   :  { %v413_v35 = vpop.permute.xlu0 %412  ;;  %vm293_vm4 = vcmp.eq.s32.totalorder %v287_v43, 1  ;;  %v303_v43 = vmax.f32 %v299_v28, %v851_v1 }
  0xbd   :  { %598 = vmatpush3.bf16.msra.mxu0 %v597_v44  ;;  %v297_v20 = vsel %vm293_vm4, %v688_v0, -inf  ;;  %v264_v3 = vmax.f32 %v262_v27, %v263_v53  ;;  %v222_v10 = vrot.slane %v221_v57, 2 }
  0xbe   :  { %v301_v29 = vsel %vm27_vm0, %v297_v20, -inf }
  0xbf   :  { %v324_v50 = vpop.permute.xlu1 %323  ;;  %v304_v44 = vmax.f32 %v301_v29, %v302_v12 }
  0xc0   :  { %591 = vmatmul.mubr.msk.f32.vlgmr.msra.gmra.mrb[0].mxu0 %vm109_vm9, %v575_v46  ;;  %v419_v62 = vpop.permute.xlu0 %418  ;;  %vm334_vm5 = vcmp.eq.s32.totalorder %v324_v50, 1  ;;  %vm421_vm9 = vcmp.eq.s32.totalorder %v413_v35, 1 }
  0xc1   :  { %v338_v22 = vsel %vm334_vm5, %v696_v2, -inf  ;;  %vm423_vm12 = vcmp.eq.s32.totalorder %v419_v62, 1  ;;  %v425_v30 = vsel %vm421_vm9, %v708_v6, -inf  ;;  %vm529_vm9 = vcmask 1041408  }
  0xc2   :  { %v342_v32 = vsel %vm27_vm0, %v338_v22, -inf  ;;  %v427_v38 = vsel %vm423_vm12, %v703_v5, -inf  ;;  %v429_v49 = vsel %vm27_vm0, %v425_v30, -inf  ;;  %vm535_vm12 = vcmask 1044480  }
  0xc3   :  { %v330_v39 = vpop.permute.xlu1 %329  ;;  %v346_v46 = vmax.f32 %v342_v32, %v343_v13  ;;  %v431_v51 = vsel %vm27_vm0, %v427_v38, -inf }
  0xc4   :  { %vm336_vm6 = vcmp.eq.s32.totalorder %v330_v39, 1  ;;  %v456_v18 = vpop.permute.xlu0 %455  ;;  %v305_v39 = vmax.f32 %v303_v43, %v304_v44 }
  0xc5   :  { %v340_v23 = vsel %vm336_vm6, %v688_v0, -inf  ;;  %vm464_vm15 = vcmp.eq.s32.totalorder %v456_v18, 1 }
  0xc6   :  { %v344_v33 = vsel %vm27_vm0, %v340_v23, -inf  ;;  %v468_v1 = vsel %vm464_vm15, %v708_v6, -inf  ;;  %v306_v9 = vrot.slane %v305_v39, 4  ;;  %v223_v23 = vmax.f32 %v221_v57, %v222_v10 }
  0xc7   :  { %v367_v4 = vpop.permute.xlu1 %366  ;;  %v347_v47 = vmax.f32 %v344_v33, %v345_v21  ;;  %v472_v11 = vsel %vm27_vm0, %v468_v1, -inf }
  0xc8   :  { %vm377_vm11 = vcmp.eq.s32.totalorder %v367_v4, 1  ;;  %v462_v41 = vpop.permute.xlu0 %461  ;;  %v307_v21 = vmax.f32 %v305_v39, %v306_v9 }
  0xc9   :  { %v381_v34 = vsel %vm377_vm11, %v696_v2, -inf  ;;  %vm466_vm1 = vcmp.eq.s32.totalorder %v462_v41, 1  ;;  %v348_v58 = vmax.f32 %v346_v46, %v347_v47  ;;  %v224_v41 = vrot.slane %v223_v23, 1 }
  0xca   :  { %v385_v48 = vsel %vm27_vm0, %v381_v34, -inf  ;;  %v470_v7 = vsel %vm466_vm1, %v703_v5, -inf  ;;  %v308_v33 = vrot.slane %v307_v21, 2  ;;  %vm533_vm11 = vcmask 1043456  }
  0xcb   :  { %v373_v17 = vpop.permute.xlu1 %372  ;;  %v389_v55 = vmax.f32 %v385_v48, %v386_v45  ;;  %v349_v12 = vrot.slane %v348_v58, 4  ;;  %v474_v15 = vsel %vm27_vm0, %v470_v7, -inf }
  0xcc   :  { %vm379_vm10 = vcmp.eq.s32.totalorder %v373_v17, 1  ;;  %v499_v62 = vpop.permute.xlu0 %498  ;;  %v265_v17 = vrot.slane %v264_v3, 2  ;;  %v309_v48 = vmax.f32 %v307_v21, %v308_v33 }
  0xcd   :  { %v383_v26 = vsel %vm379_vm10, %v688_v0, -inf  ;;  %v350_v24 = vmax.f32 %v348_v58, %v349_v12  ;;  %vm507_vm4 = vcmp.eq.s32.totalorder %v499_v62, 1  ;;  %vm531_vm10 = vcmask 1042432  }
  0xce   :  { %v387_v37 = vsel %vm27_vm0, %v383_v26, -inf  ;;  %v266_v29 = vmax.f32 %v264_v3, %v265_v17  ;;  %v310_v39 = vrot.slane %v309_v48, 1  ;;  %v541_v17 = vld [vmem:[#allocation3] sm:$0xff] }
  0xcf   :  { %v410_v31 = vpop.permute.xlu1 %409  ;;  %v390_v35 = vmax.f32 %v387_v37, %v388_v36  ;;  %v351_v34 = vrot.slane %v350_v24, 2  ;;  %v511_v36 = vsel %vm507_vm4, %v708_v6, -inf }
  0xd0   :  { %vm420_vm13 = vcmp.eq.s32.totalorder %v410_v31, 1  ;;  %v505_v20 = vpop.permute.xlu0 %504  ;;  %v267_v44 = vrot.slane %v266_v29, 1  ;;  %v311_v62 = vmax.f32 %v309_v48, %v310_v39 }
  0xd1   :  { %v424_v40 = vsel %vm420_vm13, %v696_v2, -inf  ;;  %v391_v63 = vmax.f32 %v389_v55, %v390_v35  ;;  %vm509_vm5 = vcmp.eq.s32.totalorder %v505_v20, 1  ;;  %vm537_vm13 = vcmask 1045504  }
  0xd2   :  { %v428_v52 = vsel %vm27_vm0, %v424_v40, -inf  ;;  %v513_v38 = vsel %vm509_vm5, %v703_v5, -inf  ;;  %v268_v57 = vmax.f32 %v266_v29, %v267_v44 }
  0xd3   :  { %v416_v50 = vpop.permute.xlu1 %415  ;;  %v432_v59 = vmax.f32 %v428_v52, %v429_v49  ;;  %v392_v14 = vrot.slane %v391_v63, 4  ;;  %v517_v49 = vsel %vm27_vm0, %v513_v38, -inf }
  0xd4   :  { %vm422_vm14 = vcmp.eq.s32.totalorder %v416_v50, 1  ;;  %v352_v50 = vmax.f32 %v350_v24, %v351_v34 }
  0xd5   :  { %v426_v54 = vsel %vm422_vm14, %v688_v0, -inf  ;;  %v393_v28 = vmax.f32 %v391_v63, %v392_v14  ;;  %vm539_vm14 = vcmask 1046528  }
  0xd6   :  { %v430_v56 = vsel %vm27_vm0, %v426_v54, -inf  ;;  %v353_v58 = vrot.slane %v352_v50, 1 }
  0xd7   :  { %v433_v60 = vmax.f32 %v430_v56, %v431_v51  ;;  %v453_v61 = vpop.permute.xlu1 %452  ;;  %v394_v42 = vrot.slane %v393_v28, 2  ;;  %v225_v56 = vmax.f32 %v223_v23, %v224_v41 }
  0xd8   :  { %vm463_vm2 = vcmp.eq.s32.totalorder %v453_v61, 1  ;;  %v354_v3 = vmax.f32 %v352_v50, %v353_v58 }
  0xd9   :  { %v434_v4 = vmax.f32 %v432_v59, %v433_v60  ;;  %v467_v8 = vsel %vm463_vm2, %v696_v2, -inf  ;;  %v395_v52 = vmax.f32 %v393_v28, %v394_v42  ;;  %v528_v1 = vsel %vm527_vm8, %v225_v56, %v268_v57 }
  0xda   :  { %v471_v16 = vsel %vm27_vm0, %v467_v8, -inf  ;;  %v530_v10 = vsel %vm529_vm9, %v528_v1, %v311_v62 }
  0xdb   :  { %v459_v13 = vpop.permute.xlu1 %458  ;;  %v435_v18 = vrot.slane %v434_v4, 4  ;;  %v475_v25 = vmax.f32 %v471_v16, %v472_v11  ;;  %v396_v59 = vrot.slane %v395_v52, 1  ;;  %v532_v11 = vsel %vm531_vm10, %v530_v10, %v354_v3 }
  0xdc   :  { %vm465_vm3 = vcmp.eq.s32.totalorder %v459_v13, 1 }
  0xdd   :  { %v469_v19 = vsel %vm465_vm3, %v688_v0, -inf  ;;  %v436_v30 = vmax.f32 %v434_v4, %v435_v18  ;;  %v397_v7 = vmax.f32 %v395_v52, %v396_v59 }
  0xde   :  { %v473_v22 = vsel %vm27_vm0, %v469_v19, -inf }
  0xdf   :  { %v476_v26 = vmax.f32 %v473_v22, %v474_v15  ;;  %v496_v27 = vpop.permute.xlu1 %495  ;;  %v437_v45 = vrot.slane %v436_v30, 2  ;;  %v534_v14 = vsel %vm533_vm11, %v532_v11, %v397_v7  ;;  %v104_v22 = vld [vmem:[#allocation2] sm:$0xff] }
  0xe0   :  { %vm506_vm6 = vcmp.eq.s32.totalorder %v496_v27, 1 }
  0xe1   :  { %v477_v31 = vmax.f32 %v475_v25, %v476_v26  ;;  %v510_v32 = vsel %vm506_vm6, %v696_v2, -inf  ;;  %v515_v2 = vsel %vm27_vm0, %v511_v36, -inf  ;;  %v438_v53 = vmax.f32 %v436_v30, %v437_v45 }
  0xe2   :  { %v514_v43 = vsel %vm27_vm0, %v510_v32, -inf }
  0xe3   :  { %v478_v37 = vrot.slane %v477_v31, 4  ;;  %v502_v40 = vpop.permute.xlu1 %501  ;;  %v518_v35 = vmax.f32 %v514_v43, %v515_v2  ;;  %v439_v60 = vrot.slane %v438_v53, 1 }
  0xe4   :  { %vm508_vm7 = vcmp.eq.s32.totalorder %v502_v40, 1 }
  0xe5   :  { %v479_v46 = vmax.f32 %v477_v31, %v478_v37  ;;  %v512_v47 = vsel %vm508_vm7, %v688_v0, -inf  ;;  %v440_v8 = vmax.f32 %v438_v53, %v439_v60 }
  0xe6   :  { %v516_v6 = vsel %vm27_vm0, %v512_v47, -inf }
  0xe7   :  { %v480_v5 = vrot.slane %v479_v46, 2  ;;  %v519_v51 = vmax.f32 %v516_v6, %v517_v49  ;;  %v536_v15 = vsel %vm535_vm12, %v534_v14, %v440_v8 }
  0xe9   :  { %v520_v54 = vmax.f32 %v518_v35, %v519_v51  ;;  %v481_v55 = vmax.f32 %v479_v46, %v480_v5 }
  0xeb   :  { %v521_v0 = vrot.slane %v520_v54, 4  ;;  %v482_v63 = vrot.slane %v481_v55, 1 }
  0xed   :  { %v522_v61 = vmax.f32 %v520_v54, %v521_v0  ;;  %v483_v12 = vmax.f32 %v481_v55, %v482_v63 }
  0xef   :  { %v523_v4 = vrot.slane %v522_v61, 2  ;;  %v538_v18 = vsel %vm537_vm13, %v536_v15, %v483_v12 }
  0xf1   :  { %v524_v9 = vmax.f32 %v522_v61, %v523_v4 }
  0xf3   :  { %v525_v13 = vrot.slane %v524_v9, 1 }
  0xf5   :  { %v526_v16 = vmax.f32 %v524_v9, %v525_v13 }
  0xf7   :  { %v540_v19 = vsel %vm539_vm14, %v538_v18, %v526_v16 }
  0xf8   :  { %v542_v20 = vmax.f32 %v541_v17, %v540_v19 }
  0xfa   :  { %543 = vst.msk [vmem:[#allocation3] sm:$0xff] %vm27_vm0, %v542_v20 }
 0x101   :  { %v548_v21 = vld [vmem:[#allocation3] sm:$0xff] }
 0x102   :  { %550 = vrot.lane.b32.xlu1 %v548_v21, %s653_s0 }
 0x174   :  { %v551_v26 = vpop.permute.xlu1 %550 }
 0x193   :  { %v179_v23 = vpop.f32.mrb[0].mxu0 }
 0x194   :  { %v183_v24 = vadd.f32 %v179_v23, %v104_v22  ;;  %v592_v25 = vpop.f32.mrb[1].mxu0 }
 0x196   :  { %184 = vst.msk [vmem:[#allocation2] sm:$0xff] %vm27_vm0, %v183_v24 }
 0x19d   :  { %v547_v27 = vld [vmem:[#allocation2] sm:$0xff] }
 0x19e   :  { %v553_v28 = vsel %vm27_vm0, %v547_v27, %v551_v26 }
 0x19f   :  { %554 = vst [vmem:[#allocation5] sm:$0xff] %v553_v28 }
 0x1a0   :  { %635 = shalt.err (!%p632_p4)
}
 0x1a1   :  { %s636_s16 = scalar_lea.hbm %s927_s5, 128 }
 0x1a2   :  { %p637_p5 = scmp.ne.s32.totalorder %s927_s5, %s636_s16  ;;  %p640_p6 = scmp.lt.u32.totalorder %s636_s16, %s927_s5 }
 0x1a4   :  { %p642_p7 = pnand %p640_p6, %p637_p5 }
 0x1a6   :  { %645 = shalt.err (!%p642_p7)
}
 0x1a7   :  { %564 = dma.vmem_to_hbm [thread:$0]  %s562_s12, 128, %s927_s5, [#allocation6]  }
 0x1a8   :  { %646 = dma.done.wait [#allocation6], 128  }
 0x1a9   :  { %647 = vsyncadd [#allocation6], 4294967168 }
 0x1aa   :  { %568 = vsyncpa [#allocation6], 1 }

</bundles_post_ra>
